<compile_context>
chip_gen: v5e
topology: v5e:2x2
jax: 0.10.0
libtpu: 0.0.40
codegen_flags: <defaults>
</compile_context>

<pallas_src>
import functools

import jax
import jax.numpy as jnp
from jax.experimental import pallas as pl
from jax.experimental.pallas import tpu as pltpu

IMAGE_SIZE = 784
FIRST_LAYER = 128
SECOND_LAYER = 64
THIRD_LAYER = 10
FOURTH_LAYER = 10
FIFTH_LAYER = 10
LABELS = 10

LAYER_DIMS = [
    (IMAGE_SIZE, FIRST_LAYER),
    (FIRST_LAYER, SECOND_LAYER),
    (SECOND_LAYER, THIRD_LAYER),
    (THIRD_LAYER, FOURTH_LAYER),
    (FOURTH_LAYER, FIFTH_LAYER),
    (FIFTH_LAYER, LABELS),
]

PAD = 128          # lane-dense width for all hidden / output feature dims
NEG_INF = -1e30    # baked into the padded lanes of the last bias


def _round_up(x, m):
    return ((x + m - 1) // m) * m


# --------------------------------------------------------------------------
# Kernel
# --------------------------------------------------------------------------
def _mlp_kernel(x_ref, w0_ref, ws_ref, bs_ref, o_ref):
    """Fused 6-layer MLP + log_softmax for one batch tile.

    x_ref:  (tile, 784) f32   — cast to bf16 in-kernel (saves a wrapper pass)
    w0_ref: (784, 128) bf16
    ws_ref: (5, 128, 128) bf16 — layers 1..5, zero-padded to 128x128
    bs_ref: (6, 128) f32       — biases; row 5 has -1e30 in lanes >= LABELS
    o_ref:  (tile, 128) bf16   — lanes >= LABELS hold junk; wrapper slices.
    """
    b = bs_ref[...]                                   # (6, 128) f32

    # Layer 0: 784 -> 128
    h = jnp.dot(x_ref[...].astype(jnp.bfloat16), w0_ref[...],
                preferred_element_type=jnp.float32)
    h = jnp.maximum(h + b[0:1], 0.0)

    # Layers 1..4 (hidden, zero-padded to 128 wide)
    for li in range(4):
        h = jnp.dot(h.astype(jnp.bfloat16), ws_ref[li],
                    preferred_element_type=jnp.float32)
        h = jnp.maximum(h + b[li + 1:li + 2], 0.0)

    # Layer 5: logits. Padded weight lanes are zero and padded bias lanes are
    # NEG_INF, so the padded logit lanes are masked "for free".
    logits = jnp.dot(h.astype(jnp.bfloat16), ws_ref[4],
                     preferred_element_type=jnp.float32) + b[5:6]

    # Numerically stable log_softmax (padded lanes exp-underflow to 0).
    m = jnp.max(logits, axis=-1, keepdims=True)
    shifted = logits - m
    lse = jnp.log(jnp.sum(jnp.exp(shifted), axis=-1, keepdims=True))
    o_ref[...] = (shifted - lse).astype(o_ref.dtype)


# --------------------------------------------------------------------------
# Parameters
# --------------------------------------------------------------------------
def init_params(key):
    """PyTorch nn.Linear-style init (U[-1/sqrt(in), 1/sqrt(in)]).

    Returns a flat f32 list [w0, b0, w1, b1, ...] with weights in (in, out)
    layout (transposed vs torch) at the *original* layer sizes.
    """
    params = []
    for (fan_in, fan_out) in LAYER_DIMS:
        key, kw, kb = jax.random.split(key, 3)
        bound = 1.0 / (fan_in ** 0.5)
        w = jax.random.uniform(kw, (fan_in, fan_out), jnp.float32,
                               minval=-bound, maxval=bound)
        b = jax.random.uniform(kb, (1, fan_out), jnp.float32,
                               minval=-bound, maxval=bound)
        params += [w, b]
    return params


def prepare_params(params):
    """Pack params for the kernel.

    Returns (w0, ws, bs):
      w0: (784, 128) bf16
      ws: (5, 128, 128) bf16 — layers 1..5 zero-padded to 128x128
      bs: (6, 128) f32       — zero-padded biases; row 5 padded lanes = NEG_INF
    """
    w0 = params[0].astype(jnp.bfloat16)                       # (784, 128)
    b0 = params[1].reshape(-1).astype(jnp.float32)            # (128,)

    ws, bs = [], [b0]
    for li in range(1, 6):
        fan_in, fan_out = LAYER_DIMS[li]
        w, b = params[2 * li], params[2 * li + 1]
        wp = jnp.zeros((PAD, PAD), jnp.float32).at[:fan_in, :fan_out].set(w)
        ws.append(wp.astype(jnp.bfloat16))
        fill = NEG_INF if li == 5 else 0.0
        bp = jnp.full((PAD,), fill, jnp.float32).at[:fan_out].set(b.reshape(-1))
        bs.append(bp)
    return (w0, jnp.stack(ws), jnp.stack(bs))


# --------------------------------------------------------------------------
# Wrapper
# --------------------------------------------------------------------------
@functools.partial(jax.jit, static_argnames=("batch_tile",))
def model_e_forward(x, kparams, *, batch_tile=1024):
    """x: anything that flattens to (N, 784). kparams: from prepare_params."""
    w0, ws, bs = kparams
    x2d = x.reshape(-1, IMAGE_SIZE)                  # stays f32; no pad, no cast
    n = x2d.shape[0]

    # Tile choice: big for DMA/step-overhead amortization, but capped so there
    # are >= 4 grid steps when the batch allows it (>= 2 pipelined steps per
    # v7x TensorCore under "parallel" sharding). 1024 stays within v5e's
    # 16 MiB scoped VMEM with double-buffered f32 input tiles.
    n8 = _round_up(max(n, 1), 8)
    cap = max(8, _round_up(pl.cdiv(n8, 4), 8))
    tile = min(batch_tile, cap)
    grid = pl.cdiv(n, tile)                          # partial last block OK

    cost = pl.CostEstimate(
        flops=2 * n * (IMAGE_SIZE * PAD + 5 * PAD * PAD),
        transcendentals=n * (PAD + 1),
        bytes_accessed=n * (IMAGE_SIZE * 4 + PAD * 2)
        + IMAGE_SIZE * PAD * 2 + 5 * PAD * PAD * 2 + 6 * PAD * 4,
    )

    out = pl.pallas_call(
        _mlp_kernel,
        out_shape=jax.ShapeDtypeStruct((n, PAD), jnp.bfloat16),
        grid_spec=pltpu.PrefetchScalarGridSpec(
            num_scalar_prefetch=0,
            grid=(grid,),
            in_specs=[
                pl.BlockSpec((tile, IMAGE_SIZE), lambda i: (i, 0)),
                # Constant-index full-array specs keep the small weights
                # resident in VMEM across grid steps (~0.36 MB total).
                pl.BlockSpec((IMAGE_SIZE, PAD), lambda i: (0, 0)),
                pl.BlockSpec((5, PAD, PAD), lambda i: (0, 0, 0)),
                pl.BlockSpec((6, PAD), lambda i: (0, 0)),
            ],
            out_specs=pl.BlockSpec((tile, PAD), lambda i: (i, 0)),
        ),
        compiler_params=pltpu.CompilerParams(
            dimension_semantics=("parallel",)),
        cost_estimate=cost,
    )(x2d, w0, ws, bs)

    return out[:, :LABELS].astype(jnp.float32)


# --------------------------------------------------------------------------
# References
# --------------------------------------------------------------------------
def _reference_bf16(x, params):
    """Pure-JAX mirror of the kernel math (bf16 operands, f32 accumulation,
    f32 elementwise). Excludes only the final bf16 output rounding."""
    h = x.reshape(-1, IMAGE_SIZE)
    logits = None
    for li in range(6):
        w, b = params[2 * li], params[2 * li + 1]
        y = jnp.dot(h.astype(jnp.bfloat16), w.astype(jnp.bfloat16),
                    preferred_element_type=jnp.float32) + b
        if li < 5:
            h = jnp.maximum(y, 0.0)
        else:
            logits = y
    return jax.nn.log_softmax(logits, axis=-1)


def _reference_f32(x, params):
    """Full-f32 reference matching the PyTorch module exactly."""
    h = x.reshape(-1, IMAGE_SIZE).astype(jnp.float32)
    for li in range(6):
        w, b = params[2 * li], params[2 * li + 1]
        h = h @ w + b
        if li < 5:
            h = jnp.maximum(h, 0.0)
    return jax.nn.log_softmax(h, axis=-1)


# --------------------------------------------------------------------------
if __name__ == "__main__":
    key = jax.random.PRNGKey(0)
    kp, kx = jax.random.split(key)

    params = init_params(kp)             # f32, original layer sizes
    kparams = prepare_params(params)     # packed / lane-padded kernel params

    # Small MNIST-like batch: (N, 1, 28, 28) -> flattened to (N, 784)
    x = jax.random.normal(kx, (8, 1, 28, 28), jnp.float32)

    out = model_e_forward(x, kparams)
    out = jax.block_until_ready(out)
    assert out.shape == (8, LABELS)

    # Check against the bf16-operand / f32-accum math the kernel performs
    # (tolerance covers the bf16 output rounding of the kernel slab).
    ref_bf16 = _reference_bf16(x, params)
    assert jnp.allclose(out, ref_bf16, atol=2.5e-2, rtol=2.5e-2), \
        "mismatch vs bf16 reference"

    # Looser check against the full-f32 PyTorch-equivalent forward.
    ref_f32 = _reference_f32(x, params)
    assert jnp.allclose(out, ref_f32, atol=8e-2, rtol=8e-2), \
        "mismatch vs f32 reference"

    print("KERNEL_OK")
</pallas_src>

<mosaic_0001>
module attributes {stable_mosaic.version = 11 : i64} {
  func.func @_mlp_kernel(%arg0: i32, %arg1: memref<8x784xf32, #tpu.memory_space<vmem>>, %arg2: memref<784x128xbf16, #tpu.memory_space<vmem>>, %arg3: memref<5x128x128xbf16, #tpu.memory_space<vmem>>, %arg4: memref<6x128xf32, #tpu.memory_space<vmem>>, %arg5: memref<8x128xbf16, #tpu.memory_space<vmem>>) attributes {dimension_semantics = [#tpu.dimension_semantics<parallel>], iteration_bounds = array<i64: 1>, scalar_prefetch = 0 : i64, scratch_operands = 0 : i64, tpu.core_type = #tpu.core_type<tc>, window_params = [{transform_indices = @transform_0, window_bounds = array<i64: 8, 784>}, {pipeline_mode = #tpu.pipeline_mode<synchronous>, transform_indices = @transform_1, window_bounds = array<i64: 784, 128>}, {pipeline_mode = #tpu.pipeline_mode<synchronous>, transform_indices = @transform_2, window_bounds = array<i64: 5, 128, 128>}, {pipeline_mode = #tpu.pipeline_mode<synchronous>, transform_indices = @transform_3, window_bounds = array<i64: 6, 128>}, {transform_indices = @transform_4, window_bounds = array<i64: 8, 128>}]} {
    %c0 = arith.constant 0 : index
    %c0_0 = arith.constant 0 : index
    %0 = vector.load %arg4[%c0, %c0_0] : memref<6x128xf32, #tpu.memory_space<vmem>>, vector<6x128xf32>
    %c0_1 = arith.constant 0 : index
    %c0_2 = arith.constant 0 : index
    %1 = vector.load %arg1[%c0_1, %c0_2] : memref<8x784xf32, #tpu.memory_space<vmem>>, vector<8x784xf32>
    %2 = arith.truncf %1 : vector<8x784xf32> to vector<8x784xbf16>
    %c0_3 = arith.constant 0 : index
    %c0_4 = arith.constant 0 : index
    %3 = vector.load %arg2[%c0_3, %c0_4] : memref<784x128xbf16, #tpu.memory_space<vmem>>, vector<784x128xbf16>
    %cst = arith.constant dense<0.000000e+00> : vector<8x128xf32>
    %4 = tpu.matmul %2, %3, %cst {dimension_numbers = #tpu.dot_dimension_numbers<[1], [0], [0], [1], [0, 0, 1, 1], [], []>} : vector<8x784xbf16>, vector<784x128xbf16>, vector<8x128xf32> -> vector<8x128xf32>
    %5 = vector.extract_strided_slice %0 {offsets = [0, 0], sizes = [1, 128], strides = [1, 1]} : vector<6x128xf32> to vector<1x128xf32>
    %6 = vector.broadcast %5 : vector<1x128xf32> to vector<8x128xf32>
    %7 = arith.addf %4, %6 : vector<8x128xf32>
    %cst_5 = arith.constant 0.000000e+00 : f32
    %8 = vector.broadcast %cst_5 : f32 to vector<8x128xf32>
    %9 = arith.maximumf %7, %8 : vector<8x128xf32>
    %10 = arith.truncf %9 : vector<8x128xf32> to vector<8x128xbf16>
    %c0_6 = arith.constant 0 : index
    %c0_7 = arith.constant 0 : index
    %c0_8 = arith.constant 0 : index
    %11 = vector.load %arg3[%c0_6, %c0_7, %c0_8] : memref<5x128x128xbf16, #tpu.memory_space<vmem>>, vector<1x128x128xbf16>
    %12 = vector.shape_cast %11 : vector<1x128x128xbf16> to vector<128x128xbf16>
    %cst_9 = arith.constant dense<0.000000e+00> : vector<8x128xf32>
    %13 = tpu.matmul %10, %12, %cst_9 {dimension_numbers = #tpu.dot_dimension_numbers<[1], [0], [0], [1], [0, 0, 1, 1], [], []>} : vector<8x128xbf16>, vector<128x128xbf16>, vector<8x128xf32> -> vector<8x128xf32>
    %14 = vector.extract_strided_slice %0 {offsets = [1, 0], sizes = [1, 128], strides = [1, 1]} : vector<6x128xf32> to vector<1x128xf32>
    %15 = vector.broadcast %14 : vector<1x128xf32> to vector<8x128xf32>
    %16 = arith.addf %13, %15 : vector<8x128xf32>
    %cst_10 = arith.constant 0.000000e+00 : f32
    %17 = vector.broadcast %cst_10 : f32 to vector<8x128xf32>
    %18 = arith.maximumf %16, %17 : vector<8x128xf32>
    %19 = arith.truncf %18 : vector<8x128xf32> to vector<8x128xbf16>
    %c1 = arith.constant 1 : index
    %c0_11 = arith.constant 0 : index
    %c0_12 = arith.constant 0 : index
    %20 = vector.load %arg3[%c1, %c0_11, %c0_12] : memref<5x128x128xbf16, #tpu.memory_space<vmem>>, vector<1x128x128xbf16>
    %21 = vector.shape_cast %20 : vector<1x128x128xbf16> to vector<128x128xbf16>
    %cst_13 = arith.constant dense<0.000000e+00> : vector<8x128xf32>
    %22 = tpu.matmul %19, %21, %cst_13 {dimension_numbers = #tpu.dot_dimension_numbers<[1], [0], [0], [1], [0, 0, 1, 1], [], []>} : vector<8x128xbf16>, vector<128x128xbf16>, vector<8x128xf32> -> vector<8x128xf32>
    %23 = vector.extract_strided_slice %0 {offsets = [2, 0], sizes = [1, 128], strides = [1, 1]} : vector<6x128xf32> to vector<1x128xf32>
    %24 = vector.broadcast %23 : vector<1x128xf32> to vector<8x128xf32>
    %25 = arith.addf %22, %24 : vector<8x128xf32>
    %cst_14 = arith.constant 0.000000e+00 : f32
    %26 = vector.broadcast %cst_14 : f32 to vector<8x128xf32>
    %27 = arith.maximumf %25, %26 : vector<8x128xf32>
    %28 = arith.truncf %27 : vector<8x128xf32> to vector<8x128xbf16>
    %c2 = arith.constant 2 : index
    %c0_15 = arith.constant 0 : index
    %c0_16 = arith.constant 0 : index
    %29 = vector.load %arg3[%c2, %c0_15, %c0_16] : memref<5x128x128xbf16, #tpu.memory_space<vmem>>, vector<1x128x128xbf16>
    %30 = vector.shape_cast %29 : vector<1x128x128xbf16> to vector<128x128xbf16>
    %cst_17 = arith.constant dense<0.000000e+00> : vector<8x128xf32>
    %31 = tpu.matmul %28, %30, %cst_17 {dimension_numbers = #tpu.dot_dimension_numbers<[1], [0], [0], [1], [0, 0, 1, 1], [], []>} : vector<8x128xbf16>, vector<128x128xbf16>, vector<8x128xf32> -> vector<8x128xf32>
    %32 = vector.extract_strided_slice %0 {offsets = [3, 0], sizes = [1, 128], strides = [1, 1]} : vector<6x128xf32> to vector<1x128xf32>
    %33 = vector.broadcast %32 : vector<1x128xf32> to vector<8x128xf32>
    %34 = arith.addf %31, %33 : vector<8x128xf32>
    %cst_18 = arith.constant 0.000000e+00 : f32
    %35 = vector.broadcast %cst_18 : f32 to vector<8x128xf32>
    %36 = arith.maximumf %34, %35 : vector<8x128xf32>
    %37 = arith.truncf %36 : vector<8x128xf32> to vector<8x128xbf16>
    %c3 = arith.constant 3 : index
    %c0_19 = arith.constant 0 : index
    %c0_20 = arith.constant 0 : index
    %38 = vector.load %arg3[%c3, %c0_19, %c0_20] : memref<5x128x128xbf16, #tpu.memory_space<vmem>>, vector<1x128x128xbf16>
    %39 = vector.shape_cast %38 : vector<1x128x128xbf16> to vector<128x128xbf16>
    %cst_21 = arith.constant dense<0.000000e+00> : vector<8x128xf32>
    %40 = tpu.matmul %37, %39, %cst_21 {dimension_numbers = #tpu.dot_dimension_numbers<[1], [0], [0], [1], [0, 0, 1, 1], [], []>} : vector<8x128xbf16>, vector<128x128xbf16>, vector<8x128xf32> -> vector<8x128xf32>
    %41 = vector.extract_strided_slice %0 {offsets = [4, 0], sizes = [1, 128], strides = [1, 1]} : vector<6x128xf32> to vector<1x128xf32>
    %42 = vector.broadcast %41 : vector<1x128xf32> to vector<8x128xf32>
    %43 = arith.addf %40, %42 : vector<8x128xf32>
    %cst_22 = arith.constant 0.000000e+00 : f32
    %44 = vector.broadcast %cst_22 : f32 to vector<8x128xf32>
    %45 = arith.maximumf %43, %44 : vector<8x128xf32>
    %46 = arith.truncf %45 : vector<8x128xf32> to vector<8x128xbf16>
    %c4 = arith.constant 4 : index
    %c0_23 = arith.constant 0 : index
    %c0_24 = arith.constant 0 : index
    %47 = vector.load %arg3[%c4, %c0_23, %c0_24] : memref<5x128x128xbf16, #tpu.memory_space<vmem>>, vector<1x128x128xbf16>
    %48 = vector.shape_cast %47 : vector<1x128x128xbf16> to vector<128x128xbf16>
    %cst_25 = arith.constant dense<0.000000e+00> : vector<8x128xf32>
    %49 = tpu.matmul %46, %48, %cst_25 {dimension_numbers = #tpu.dot_dimension_numbers<[1], [0], [0], [1], [0, 0, 1, 1], [], []>} : vector<8x128xbf16>, vector<128x128xbf16>, vector<8x128xf32> -> vector<8x128xf32>
    %50 = vector.extract_strided_slice %0 {offsets = [5, 0], sizes = [1, 128], strides = [1, 1]} : vector<6x128xf32> to vector<1x128xf32>
    %51 = vector.broadcast %50 : vector<1x128xf32> to vector<8x128xf32>
    %52 = arith.addf %49, %51 : vector<8x128xf32>
    %cst_26 = arith.constant dense<0xFF800000> : vector<8xf32>
    %53 = vector.multi_reduction <maximumf>, %52, %cst_26 [1] : vector<8x128xf32> to vector<8xf32>
    %54 = vector.shape_cast %53 : vector<8xf32> to vector<8x1xf32>
    %55 = vector.broadcast %54 : vector<8x1xf32> to vector<8x128xf32>
    %56 = arith.subf %52, %55 : vector<8x128xf32>
    %57 = math.exp %56 : vector<8x128xf32>
    %cst_27 = arith.constant dense<0.000000e+00> : vector<8xf32>
    %58 = vector.multi_reduction <add>, %57, %cst_27 [1] : vector<8x128xf32> to vector<8xf32>
    %59 = vector.shape_cast %58 : vector<8xf32> to vector<8x1xf32>
    %60 = math.log %59 : vector<8x1xf32>
    %61 = vector.broadcast %60 : vector<8x1xf32> to vector<8x128xf32>
    %62 = arith.subf %56, %61 : vector<8x128xf32>
    %63 = arith.truncf %62 : vector<8x128xf32> to vector<8x128xbf16>
    %c0_28 = arith.constant 0 : index
    %c0_29 = arith.constant 0 : index
    %64 = vector.load %arg5[%c0_28, %c0_29] : memref<8x128xbf16, #tpu.memory_space<vmem>>, vector<8x128xbf16>
    tpu.vector_store %arg5[%c0_28, %c0_29], %63 {strides = array<i32>} : memref<8x128xbf16, #tpu.memory_space<vmem>>, vector<8x128xbf16>,
    return
  }
  func.func @transform_0(%arg0: i32) -> (i32, i32) {
    %c0_i32 = arith.constant 0 : i32
    %c0_i32_0 = arith.constant 0 : i32
    return %arg0, %c0_i32 : i32, i32
  }
  func.func @transform_1(%arg0: i32) -> (i32, i32) {
    %c0_i32 = arith.constant 0 : i32
    %c0_i32_0 = arith.constant 0 : i32
    %c0_i32_1 = arith.constant 0 : i32
    return %c0_i32, %c0_i32_0 : i32, i32
  }
  func.func @transform_2(%arg0: i32) -> (i32, i32, i32) {
    %c0_i32 = arith.constant 0 : i32
    %c0_i32_0 = arith.constant 0 : i32
    %c0_i32_1 = arith.constant 0 : i32
    %c0_i32_2 = arith.constant 0 : i32
    return %c0_i32, %c0_i32_0, %c0_i32_1 : i32, i32, i32
  }
  func.func @transform_3(%arg0: i32) -> (i32, i32) {
    %c0_i32 = arith.constant 0 : i32
    %c0_i32_0 = arith.constant 0 : i32
    %c0_i32_1 = arith.constant 0 : i32
    return %c0_i32, %c0_i32_0 : i32, i32
  }
  func.func @transform_4(%arg0: i32) -> (i32, i32) {
    %c0_i32 = arith.constant 0 : i32
    %c0_i32_0 = arith.constant 0 : i32
    return %arg0, %c0_i32 : i32, i32
  }
}

</mosaic_0001>

<bundles_post_ra>
// kernel: model_e_forward.1
= control target key start
LH: loop header
LB: loop body
LE: loop exit
PB: predicated region body
PF: predicated region fallthrough
CT: control target
= control target key end

     0   :  { %vm426_vm0 = vcmask 130048   ;;  %s1782_s1 = inlined_call_operand.vmem [shape: bf16[784,128], index: 1, kind: input, shape index: {}]   ;;  %s1783_s0 = inlined_call_operand.vmem [shape: f32[8,784], index: 0, kind: input, shape index: {}]   ;;  %s1784_s2 = inlined_call_operand.vmem [shape: bf16[5,128,128], index: 2, kind: input, shape index: {}]   ;;  %s1785_s3 = inlined_call_operand.vmem [shape: f32[6,128], index: 3, kind: input, shape index: {}]   ;;  %s1786_s4 = inlined_call_operand.vmem [shape: bf16[8,128], index: 4, kind: output, shape index: {}]  }
   0x1   :  { %v1369_v0 = vld [vmem:[%s1782_s1 + $0x38] sm:$0xff]  ;;  %v1368_v3 = vld [vmem:[%s1782_s1 + $0x30] sm:$0xff]  ;;  %v1367_v8 = vld [vmem:[%s1782_s1 + $0x28] sm:$0xff] }
   0x2   :  { %v1377_v1 = vld [vmem:[%s1782_s1 + $0x78] sm:$0xff]  ;;  %430 = vmatpush.bf16.msra.mxu0 %v1369_v0  ;;  %v1376_v4 = vld [vmem:[%s1782_s1 + $0x70] sm:$0xff]  ;;  %v1375_v9 = vld [vmem:[%s1782_s1 + $0x68] sm:$0xff] }
   0x3   :  { %v1385_v2 = vld [vmem:[%s1782_s1 + $0xb8] sm:$0xff]  ;;  %443 = vmatpush.bf16.msra.mxu1 %v1377_v1  ;;  %v1384_v5 = vld [vmem:[%s1782_s1 + $0xb0] sm:$0xff]  ;;  %v1383_v10 = vld [vmem:[%s1782_s1 + $0xa8] sm:$0xff] }
   0x4   :  { %456 = vmatpush.bf16.msra.mxu2 %v1385_v2  ;;  %v1393_v6 = vld [vmem:[%s1782_s1 + $0xf8] sm:$0xff]  ;;  %v1392_v7 = vld [vmem:[%s1782_s1 + $0xf0] sm:$0xff]  ;;  %v1391_v11 = vld [vmem:[%s1782_s1 + $0xe8] sm:$0xff] }
   0x5   :  { %469 = vmatpush.bf16.msra.mxu3 %v1393_v6  ;;  %v1366_v12 = vld [vmem:[%s1782_s1 + $0x20] sm:$0xff]  ;;  %v1365_v16 = vld [vmem:[%s1782_s1 + $0x18] sm:$0xff]  ;;  %v1364_v20 = vld [vmem:[%s1782_s1 + $0x10] sm:$0xff] }
   0x6   :  { %431 = vmatpush.bf16.msra.mxu0 %v1368_v3  ;;  %v1374_v13 = vld [vmem:[%s1782_s1 + $0x60] sm:$0xff]  ;;  %v1373_v17 = vld [vmem:[%s1782_s1 + $0x58] sm:$0xff]  ;;  %v1372_v21 = vld [vmem:[%s1782_s1 + $0x50] sm:$0xff] }
   0x7   :  { %444 = vmatpush.bf16.msra.mxu1 %v1376_v4  ;;  %v1382_v14 = vld [vmem:[%s1782_s1 + $0xa0] sm:$0xff]  ;;  %v1381_v18 = vld [vmem:[%s1782_s1 + $0x98] sm:$0xff]  ;;  %v1380_v22 = vld [vmem:[%s1782_s1 + $0x90] sm:$0xff] }
   0x8   :  { %457 = vmatpush.bf16.msra.mxu2 %v1384_v5  ;;  %v1390_v15 = vld [vmem:[%s1782_s1 + $0xe0] sm:$0xff]  ;;  %v1389_v19 = vld [vmem:[%s1782_s1 + $0xd8] sm:$0xff]  ;;  %v1388_v23 = vld [vmem:[%s1782_s1 + $0xd0] sm:$0xff] }
   0x9   :  { %470 = vmatpush.bf16.msra.mxu3 %v1392_v7  ;;  %v1363_v24 = vld [vmem:[%s1782_s1 + $0x8] sm:$0xff]  ;;  %v1362_v27 = vld [vmem:[%s1782_s1] sm:$0xff]  ;;  %v1401_v32 = vld [vmem:[%s1782_s1 + $0x138] sm:$0xff] }
   0xa   :  { %432 = vmatpush.bf16.msra.mxu0 %v1367_v8  ;;  %v1371_v25 = vld [vmem:[%s1782_s1 + $0x48] sm:$0xff]  ;;  %v1370_v29 = vld [vmem:[%s1782_s1 + $0x40] sm:$0xff]  ;;  %v1409_v33 = vld [vmem:[%s1782_s1 + $0x178] sm:$0xff] }
   0xb   :  { %445 = vmatpush.bf16.msra.mxu1 %v1375_v9  ;;  %v1379_v26 = vld [vmem:[%s1782_s1 + $0x88] sm:$0xff]  ;;  %v19_v30 = vld [vmem:[%s1783_s0] sm:$0xff]  ;;  %v21_v35 = vld [vmem:[%s1783_s0 + $0x10] sm:$0xff] }
   0xc   :  { %458 = vmatpush.bf16.msra.mxu2 %v1383_v10  ;;  %v1387_v28 = vld [vmem:[%s1782_s1 + $0xc8] sm:$0xff]  ;;  %v1378_v34 = vld [vmem:[%s1782_s1 + $0x80] sm:$0xff]  ;;  %v26_v36 = vpack.c.bf16 %v19_v30, %v19_v30  ;;  %v22_v40 = vld [vmem:[%s1783_s0 + $0x18] sm:$0xff]  ;;  %v28_v43 = vpack.c.bf16 %v21_v35, %v21_v35 }
   0xd   :  { %471 = vmatpush.bf16.msra.mxu3 %v1391_v11  ;;  %v20_v31 = vld [vmem:[%s1783_s0 + $0x8] sm:$0xff]  ;;  %v1386_v38 = vld [vmem:[%s1782_s1 + $0xc0] sm:$0xff]  ;;  %v1400_v41 = vld [vmem:[%s1782_s1 + $0x130] sm:$0xff]  ;;  %v29_v44 = vpack.c.bf16 %v22_v40, %v22_v40 }
   0xe   :  { %433 = vmatpush.bf16.msra.mxu0 %v1366_v12  ;;  %v27_v37 = vpack.c.bf16 %v20_v31, %v20_v31  ;;  %v1410_v39 = vld [vmem:[%s1782_s1 + $0x180] sm:$0xff]  ;;  %v1408_v42 = vld [vmem:[%s1782_s1 + $0x170] sm:$0xff]  ;;  %v1399_v45 = vld [vmem:[%s1782_s1 + $0x128] sm:$0xff] }
   0xf   :  { %446 = vmatpush.bf16.msra.mxu1 %v1374_v13  ;;  %v1407_v46 = vld [vmem:[%s1782_s1 + $0x168] sm:$0xff]  ;;  %v1398_v47 = vld [vmem:[%s1782_s1 + $0x120] sm:$0xff]  ;;  %v1397_v49 = vld [vmem:[%s1782_s1 + $0x118] sm:$0xff] }
  0x10   :  { %459 = vmatpush.bf16.msra.mxu2 %v1382_v14  ;;  %v1406_v48 = vld [vmem:[%s1782_s1 + $0x160] sm:$0xff]  ;;  %v1405_v50 = vld [vmem:[%s1782_s1 + $0x158] sm:$0xff]  ;;  %v25_v51 = vld [vmem:[%s1783_s0 + $0x30] sm:$0xff] }
  0x11   :  { %472 = vmatpush.bf16.msra.mxu3 %v1390_v15  ;;  %v1396_v52 = vld [vmem:[%s1782_s1 + $0x110] sm:$0xff]  ;;  %v32_v54 = vpack.c.bf16 %v25_v51, %v25_v51  ;;  %v1395_v55 = vld [vmem:[%s1782_s1 + $0x108] sm:$0xff]  ;;  %v1394_v57 = vld [vmem:[%s1782_s1 + $0x100] sm:$0xff] }
  0x12   :  { %434 = vmatpush.bf16.msra.mxu0 %v1365_v16  ;;  %v1404_v53 = vld [vmem:[%s1782_s1 + $0x150] sm:$0xff]  ;;  %v1403_v56 = vld [vmem:[%s1782_s1 + $0x148] sm:$0xff]  ;;  %v1402_v58 = vld [vmem:[%s1782_s1 + $0x140] sm:$0xff] }
  0x13   :  { %447 = vmatpush.bf16.msra.mxu1 %v1373_v17  ;;  %v23_v59 = vld [vmem:[%s1783_s0 + $0x20] sm:$0xff]  ;;  %v24_v60 = vld [vmem:[%s1783_s0 + $0x28] sm:$0xff]  ;;  %v1418_v63 = vld [vmem:[%s1784_s2 + $0x38] sm:$0xff] }
  0x14   :  { %460 = vmatpush.bf16.msra.mxu2 %v1381_v18  ;;  %v30_v61 = vpack.c.bf16 %v23_v59, %v23_v59  ;;  %v31_v62 = vpack.c.bf16 %v24_v60, %v24_v60  ;;  %v1417_v0 = vld [vmem:[%s1784_s2 + $0x30] sm:$0xff]  ;;  %v1416_v1 = vld [vmem:[%s1784_s2 + $0x28] sm:$0xff]  ;;  %v1415_v2 = vld [vmem:[%s1784_s2 + $0x20] sm:$0xff] }
  0x15   :  { %473 = vmatpush.bf16.msra.mxu3 %v1389_v19  ;;  %v1414_v3 = vld [vmem:[%s1784_s2 + $0x18] sm:$0xff]  ;;  %v1413_v4 = vld [vmem:[%s1784_s2 + $0x10] sm:$0xff]  ;;  %v1412_v5 = vld [vmem:[%s1784_s2 + $0x8] sm:$0xff] }
  0x16   :  { %435 = vmatpush.bf16.msra.mxu0 %v1364_v20  ;;  %v1411_v8 = vld [vmem:[%s1784_s2] sm:$0xff]  ;;  %v1426_v11 = vld [vmem:[%s1784_s2 + $0x78] sm:$0xff]  ;;  %v1425_v15 = vld [vmem:[%s1784_s2 + $0x70] sm:$0xff] }
  0x17   :  { %448 = vmatpush.bf16.msra.mxu1 %v1372_v21  ;;  %v1678_v12 = vld [vmem:[%s1785_s3] sm:$0x3f]  ;;  %v1424_v17 = vld [vmem:[%s1784_s2 + $0x68] sm:$0xff]  ;;  %v1434_v40 = vld [vmem:[%s1784_s2 + $0xb8] sm:$0xff] }
  0x18   :  { %461 = vmatpush.bf16.msra.mxu2 %v1380_v22  ;;  %v131_v16 = vperm.slane %v1678_v12, 0  ;;  %v1423_v21 = vld [vmem:[%s1784_s2 + $0x60] sm:$0xff]  ;;  %v1437_v59 = vld [vmem:[%s1784_s2 + $0xd0] sm:$0xff]  ;;  %v620_v60 = vperm.slane %v1678_v12, 2 }
  0x19   :  { %474 = vmatpush.bf16.msra.mxu3 %v1388_v23  ;;  %v1422_v23 = vld [vmem:[%s1784_s2 + $0x58] sm:$0xff] }
  0x1a   :  { %436 = vmatpush.bf16.msra.mxu0 %v1363_v24 }
  0x1b   :  { %449 = vmatpush.bf16.msra.mxu1 %v1371_v25 }
  0x1c   :  { %462 = vmatpush.bf16.msra.mxu2 %v1379_v26  ;;  %v1421_v26 = vld [vmem:[%s1784_s2 + $0x50] sm:$0xff] }
  0x1d   :  { %475 = vmatpush.bf16.msra.mxu3 %v1387_v28 }
  0x1e   :  { %437 = vmatpush.bf16.msra.mxu0 %v1362_v27 }
  0x1f   :  { %450 = vmatpush.bf16.msra.mxu1 %v1370_v29 }
  0x20   :  { %463 = vmatpush.bf16.msra.mxu2 %v1378_v34 }
  0x21   :  { %438 = vmatmul.bf16.vlgmr.msra.gmra.mxu0 %v26_v36  ;;  %476 = vmatpush.bf16.msra.mxu3 %v1386_v38  ;;  %v1420_v38 = vld [vmem:[%s1784_s2 + $0x48] sm:$0xff] }
  0x22   :  { %482 = vmatpush.bf16.msrb.mxu0 %v1401_v32  ;;  %451 = vmatmul.bf16.vlgmr.msra.gmra.mxu1 %v27_v37 }
  0x23   :  { %495 = vmatpush.bf16.msrb.mxu1 %v1409_v33  ;;  %464 = vmatmul.bf16.vlgmr.msra.gmra.mxu2 %v28_v43  ;;  %v1431_v43 = vld [vmem:[%s1784_s2 + $0xa0] sm:$0xff] }
  0x24   :  { %515 = vmatpush.bf16.msrb.mxu2 %v1410_v39  ;;  %477 = vmatmul.bf16.vlgmr.msra.gmra.mxu3 %v29_v44  ;;  %v1419_v39 = vld [vmem:[%s1784_s2 + $0x40] sm:$0xff]  ;;  %v1430_v44 = vld [vmem:[%s1784_s2 + $0x98] sm:$0xff] }
  0x25   :  { %588 = vmatpush.bf16.msrb.mxu3 %v1418_v63 }
  0x26   :  { %483 = vmatpush.bf16.msrb.mxu0 %v1400_v41  ;;  %v1433_v41 = vld [vmem:[%s1784_s2 + $0xb0] sm:$0xff] }
  0x27   :  { %496 = vmatpush.bf16.msrb.mxu1 %v1408_v42  ;;  %v1432_v42 = vld [vmem:[%s1784_s2 + $0xa8] sm:$0xff] }
  0x28   :  { %669 = vmatpush.bf16.msra.mxu2 %v1426_v11 }
  0x29   :  { %589 = vmatpush.bf16.msrb.mxu3 %v1417_v0 }
  0x2a   :  { %484 = vmatpush.bf16.msrb.mxu0 %v1399_v45  ;;  %v1429_v45 = vld [vmem:[%s1784_s2 + $0x90] sm:$0xff] }
  0x2b   :  { %497 = vmatpush.bf16.msrb.mxu1 %v1407_v46  ;;  %v539_v46 = vperm.slane %v1678_v12, 1 }
  0x2c   :  { %670 = vmatpush.bf16.msra.mxu2 %v1425_v15 }
  0x2d   :  { %590 = vmatpush.bf16.msrb.mxu3 %v1416_v1 }
  0x2e   :  { %485 = vmatpush.bf16.msrb.mxu0 %v1398_v47 }
  0x2f   :  { %498 = vmatpush.bf16.msrb.mxu1 %v1406_v48 }
  0x30   :  { %671 = vmatpush.bf16.msra.mxu2 %v1424_v17  ;;  %v1444_v17 = vld [vmem:[%s1784_s2 + $0x108] sm:$0xff] }
  0x31   :  { %591 = vmatpush.bf16.msrb.mxu3 %v1415_v2  ;;  %v1436_v2 = vld [vmem:[%s1784_s2 + $0xc8] sm:$0xff] }
  0x32   :  { %486 = vmatpush.bf16.msrb.mxu0 %v1397_v49 }
  0x33   :  { %499 = vmatpush.bf16.msrb.mxu1 %v1405_v50  ;;  %1137 = vmatmul.msk.bf16.vlgmr.msrb.gmra.mxu2 %vm426_vm0, %v32_v54  ;;  %v1442_v54 = vld [vmem:[%s1784_s2 + $0xf8] sm:$0xff] }
  0x34   :  { %672 = vmatpush.bf16.msra.mxu2 %v1423_v21 }
  0x35   :  { %592 = vmatpush.bf16.msrb.mxu3 %v1414_v3  ;;  %v1435_v3 = vld [vmem:[%s1784_s2 + $0xc0] sm:$0xff] }
  0x36   :  { %487 = vmatpush.bf16.msrb.mxu0 %v1396_v52  ;;  %v1428_v52 = vld [vmem:[%s1784_s2 + $0x88] sm:$0xff] }
  0x37   :  { %500 = vmatpush.bf16.msrb.mxu1 %v1404_v53  ;;  %v1427_v53 = vld [vmem:[%s1784_s2 + $0x80] sm:$0xff] }
  0x38   :  { %673 = vmatpush.bf16.msra.mxu2 %v1422_v23 }
  0x39   :  { %593 = vmatpush.bf16.msrb.mxu3 %v1413_v4  ;;  %v1450_v4 = vld [vmem:[%s1784_s2 + $0x138] sm:$0xff] }
  0x3a   :  { %488 = vmatpush.bf16.msrb.mxu0 %v1395_v55  ;;  %v1441_v55 = vld [vmem:[%s1784_s2 + $0xf0] sm:$0xff] }
  0x3b   :  { %501 = vmatpush.bf16.msrb.mxu1 %v1403_v56  ;;  %v1440_v56 = vld [vmem:[%s1784_s2 + $0xe8] sm:$0xff] }
  0x3c   :  { %674 = vmatpush.bf16.msra.mxu2 %v1421_v26 }
  0x3d   :  { %594 = vmatpush.bf16.msrb.mxu3 %v1412_v5  ;;  %v1449_v5 = vld [vmem:[%s1784_s2 + $0x130] sm:$0xff] }
  0x3e   :  { %489 = vmatpush.bf16.msrb.mxu0 %v1394_v57  ;;  %v1439_v57 = vld [vmem:[%s1784_s2 + $0xe0] sm:$0xff] }
  0x3f   :  { %502 = vmatpush.bf16.msrb.mxu1 %v1402_v58  ;;  %v1438_v58 = vld [vmem:[%s1784_s2 + $0xd8] sm:$0xff] }
  0x40   :  { %675 = vmatpush.bf16.msra.mxu2 %v1420_v38 }
  0x41   :  { %490 = vmatmul.bf16.vlgmr.msrb.gmra.mxu0 %v30_v61  ;;  %595 = vmatpush.bf16.msrb.mxu3 %v1411_v8  ;;  %v1446_v8 = vld [vmem:[%s1784_s2 + $0x118] sm:$0xff] }
  0x42   :  { %503 = vmatmul.bf16.vlgmr.msrb.gmra.mxu1 %v31_v62  ;;  %750 = vmatpush.bf16.msra.mxu0 %v1434_v40 }
  0x43   :  { %831 = vmatpush.bf16.msra.mxu1 %v1442_v54 }
  0x44   :  { %676 = vmatpush.bf16.msra.mxu2 %v1419_v39 }
  0x45   :  { %912 = vmatpush.bf16.msra.mxu3 %v1450_v4 }
  0x46   :  { %751 = vmatpush.bf16.msra.mxu0 %v1433_v41 }
  0x47   :  { %832 = vmatpush.bf16.msra.mxu1 %v1441_v55 }
  0x49   :  { %913 = vmatpush.bf16.msra.mxu3 %v1449_v5 }
  0x4a   :  { %752 = vmatpush.bf16.msra.mxu0 %v1432_v42 }
  0x4b   :  { %833 = vmatpush.bf16.msra.mxu1 %v1440_v56 }
  0x4e   :  { %753 = vmatpush.bf16.msra.mxu0 %v1431_v43 }
  0x4f   :  { %834 = vmatpush.bf16.msra.mxu1 %v1439_v57 }
  0x52   :  { %754 = vmatpush.bf16.msra.mxu0 %v1430_v44 }
  0x53   :  { %835 = vmatpush.bf16.msra.mxu1 %v1438_v58 }
  0x56   :  { %755 = vmatpush.bf16.msra.mxu0 %v1429_v45 }
  0x57   :  { %836 = vmatpush.bf16.msra.mxu1 %v1437_v59 }
  0x5a   :  { %756 = vmatpush.bf16.msra.mxu0 %v1428_v52 }
  0x5b   :  { %837 = vmatpush.bf16.msra.mxu1 %v1436_v2 }
  0x5e   :  { %757 = vmatpush.bf16.msra.mxu0 %v1427_v53 }
  0x5f   :  { %838 = vmatpush.bf16.msra.mxu1 %v1435_v3 }
  0x9e   :  { %v439_v6 = vpop.f32.mrf.mxu0 }
  0x9f   :  { %v452_v7 = vpop.f32.mrf.mxu1  ;;  %v440_v18 = vadd.f32 %v439_v6, %v131_v16  ;;  %v1448_v6 = vld [vmem:[%s1784_s2 + $0x128] sm:$0xff] }
  0xa0   :  { %914 = vmatpush.bf16.msra.mxu3 %v1448_v6 }
  0xa1   :  { %v453_v22 = vadd.f32 %v452_v7, %v440_v18  ;;  %v1447_v7 = vld [vmem:[%s1784_s2 + $0x120] sm:$0xff] }
  0xa2   :  { %v1443_v18 = vld [vmem:[%s1784_s2 + $0x100] sm:$0xff] }
  0xa4   :  { %915 = vmatpush.bf16.msra.mxu3 %v1447_v7 }
  0xa6   :  { %v441_v9 = vpop.f32.mrf.mxu0  ;;  %v465_v13 = vpop.f32.mrf.mxu2 }
  0xa7   :  { %v454_v10 = vpop.f32.mrf.mxu1  ;;  %v478_v14 = vpop.f32.mrf.mxu3  ;;  %v466_v24 = vadd.f32 %v465_v13, %v453_v22  ;;  %v1445_v9 = vld [vmem:[%s1784_s2 + $0x110] sm:$0xff] }
  0xa8   :  { %916 = vmatpush.bf16.msra.mxu3 %v1446_v8  ;;  %v701_v10 = vperm.slane %v1678_v12, 3 }
  0xa9   :  { %v479_v27 = vadd.f32 %v478_v14, %v466_v24 }
  0xac   :  { %917 = vmatpush.bf16.msra.mxu3 %v1445_v9 }
  0xae   :  { %v467_v19 = vpop.f32.mrf.mxu2 }
  0xaf   :  { %v480_v20 = vpop.f32.mrf.mxu3  ;;  %v782_v19 = vperm.slane %v1678_v12, 4 }
  0xb0   :  { %918 = vmatpush.bf16.msra.mxu3 %v1444_v17 }
  0xb4   :  { %919 = vmatpush.bf16.msra.mxu3 %v1443_v18 }
  0xb6   :  { %v517_v25 = vpop.f32.mrf.mxu2 }
  0xbe   :  { %v491_v28 = vpop.f32.mrf.mxu0  ;;  %v519_v32 = vpop.f32.mrf.mxu2 }
  0xbf   :  { %v504_v29 = vpop.f32.mrf.mxu1  ;;  %v492_v30 = vadd.f32 %v491_v28, %v479_v27 }
  0xc1   :  { %v505_v31 = vadd.f32 %v504_v29, %v492_v30 }
  0xc3   :  { %v518_v33 = vadd.f32 %v517_v25, %v505_v31  ;;  %v863_v25 = vperm.slane %v1678_v12, 5 }
  0xc5   :  { %v521_v34 = vmax.f32 %v518_v33, 0.0 }
  0xc6   :  { %v493_v35 = vpop.f32.mrf.mxu0 }
  0xc7   :  { %v506_v36 = vpop.f32.mrf.mxu1  ;;  %v522_v37 = vpack.c.bf16 %v521_v34, %v521_v34 }
  0xc9   :  { %596 = vmatmul.bf16.vlgmr.msrb.gmra.mxu3 %v522_v37 }
 0x14c   :  { %v597_v47 = vpop.f32.mrf.mxu3 }
 0x14d   :  { %v598_v48 = vadd.f32 %v597_v47, %v539_v46 }
 0x14f   :  { %v601_v49 = vmax.f32 %v598_v48, 0.0 }
 0x151   :  { %v602_v50 = vpack.c.bf16 %v601_v49, %v601_v49 }
 0x153   :  { %677 = vmatmul.bf16.vlgmr.msra.gmra.mxu2 %v602_v50 }
 0x154   :  { %v599_v51 = vpop.f32.mrf.mxu3 }
 0x1d6   :  { %v678_v61 = vpop.f32.mrf.mxu2 }
 0x1d7   :  { %v679_v62 = vadd.f32 %v678_v61, %v620_v60 }
 0x1d9   :  { %v682_v63 = vmax.f32 %v679_v62, 0.0 }
 0x1db   :  { %v683_v0 = vpack.c.bf16 %v682_v63, %v682_v63 }
 0x1dd   :  { %758 = vmatmul.bf16.vlgmr.msra.gmra.mxu0 %v683_v0 }
 0x1de   :  { %v680_v1 = vpop.f32.mrf.mxu2 }
 0x25a   :  { %v759_v11 = vpop.f32.mrf.mxu0 }
 0x25b   :  { %v760_v13 = vadd.f32 %v759_v11, %v701_v10 }
 0x25d   :  { %v763_v14 = vmax.f32 %v760_v13, 0.0 }
 0x25f   :  { %v764_v15 = vpack.c.bf16 %v763_v14, %v763_v14 }
 0x261   :  { %839 = vmatmul.bf16.vlgmr.msra.gmra.mxu1 %v764_v15 }
 0x262   :  { %v761_v16 = vpop.f32.mrf.mxu0 }
 0x2de   :  { %v840_v20 = vpop.f32.mrf.mxu1 }
 0x2df   :  { %v841_v21 = vadd.f32 %v840_v20, %v782_v19 }
 0x2e1   :  { %v844_v22 = vmax.f32 %v841_v21, 0.0 }
 0x2e3   :  { %v845_v23 = vpack.c.bf16 %v844_v22, %v844_v22 }
 0x2e5   :  { %920 = vmatmul.bf16.vlgmr.msra.gmra.mxu3 %v845_v23 }
 0x2e6   :  { %v842_v24 = vpop.f32.mrf.mxu1 }
 0x368   :  { %v921_v26 = vpop.f32.mrf.mxu3 }
 0x369   :  { %v922_v27 = vadd.f32 %v921_v26, %v863_v25 }
 0x36b   :  { %925 = vmax.xlane.f32.xlu0 %v922_v27 }
 0x370   :  { %v923_v28 = vpop.f32.mrf.mxu3 }
 0x3de   :  { %v926_v29 = vpop.xlane.xlu0 %925 }
 0x3df   :  { %v927_v30 = vsub.f32 %v922_v27, %v926_v29 }
 0x3e1   :  { %v928_v31 = vmul.f32 1.442695, %v927_v30 }
 0x3e3   :  { %1451 = vpow2.f32 %v928_v31 }
 0x3e9   :  { %v1452_v32 = vpop.eup %1451 }
 0x3ea   :  { %930 = vadd.xlane.f32.xlu0 %v1452_v32 }
 0x45d   :  { %v931_v33 = vpop.xlane.xlu0 %930 }
 0x45e   :  { %1453 = vlog2.f32 %v931_v33 }
 0x464   :  { %v1454_v34 = vpop.eup %1453 }
 0x465   :  { %v933_v35 = vmul.f32 0.6931472, %v1454_v34 }
 0x467   :  { %v934_v36 = vsub.f32 %v927_v30, %v933_v35 }
 0x469   :  { %v935_v37 = vpack.c.bf16 %v934_v36, %v934_v36 }
 0x46b   :  { %936 = vst [vmem:[%s1786_s4] sm:$0xf] %v935_v37 }

</bundles_post_ra>
